<compile_context>
chip_gen: v7x
topology: tpu7x:2x2x1
jax: 0.10.0
libtpu: 0.0.40
codegen_flags: <defaults>
</compile_context>

<pallas_src>
import functools

import jax
import jax.numpy as jnp
from jax import lax
from jax.experimental import pallas as pl
from jax.experimental.pallas import tpu as pltpu


def _round_up(x, m):
    return ((x + m - 1) // m) * m


# ----------------------------------------------------------------------------
# Kernel: fused 3-layer actor+critic MLP over a (TB, num_inputs) batch tile.
# ----------------------------------------------------------------------------
def _ppo_fused_kernel(num_actions, x_ref, w1_ref, b1_ref, w2_ref, b2_ref,
                      w3_ref, b3_ref, out_ref):
    x = x_ref[...].astype(jnp.bfloat16)                              # (TB, IN)
    h = jnp.dot(x, w1_ref[...],
                preferred_element_type=jnp.float32) + b1_ref[...]    # (TB, HID)
    h = jnp.maximum(h, 0.0)                                          # actor || critic
    h = jnp.dot(h.astype(jnp.bfloat16), w2_ref[...],
                preferred_element_type=jnp.float32) + b2_ref[...]
    h = jnp.maximum(h, 0.0)
    z = jnp.dot(h.astype(jnp.bfloat16), w3_ref[...],
                preferred_element_type=jnp.float32) + b3_ref[...]    # (TB, OUT_PAD)
    # cols [0, num_actions) -> tanh(action_mean); col num_actions -> raw value;
    # padded cols are exact zeros (zero weights/bias) and are sliced off outside.
    col = lax.broadcasted_iota(jnp.int32, z.shape, 1)
    out_ref[...] = jnp.where(col < num_actions, jnp.tanh(z), z).astype(out_ref.dtype)


# ----------------------------------------------------------------------------
# Parameter packing: fuse actor+critic, pad hidden/output lanes to 128,
# cast weights to bf16 (biases stay f32 for the VPU broadcast-add).
# ----------------------------------------------------------------------------
def pack_params(params, num_inputs, num_actions, hidden_size):
    H = hidden_size
    hid_pad = _round_up(2 * H, 128)
    out_pad = _round_up(num_actions + 1, 128)

    w1 = jnp.zeros((num_inputs, hid_pad), jnp.float32)
    w1 = w1.at[:, :H].set(params["a_w1"])
    w1 = w1.at[:, H:2 * H].set(params["c_w1"])
    b1 = jnp.zeros((1, hid_pad), jnp.float32)
    b1 = b1.at[0, :H].set(params["a_b1"])
    b1 = b1.at[0, H:2 * H].set(params["c_b1"])

    w2 = jnp.zeros((hid_pad, hid_pad), jnp.float32)
    w2 = w2.at[:H, :H].set(params["a_w2"])
    w2 = w2.at[H:2 * H, H:2 * H].set(params["c_w2"])
    b2 = jnp.zeros((1, hid_pad), jnp.float32)
    b2 = b2.at[0, :H].set(params["a_b2"])
    b2 = b2.at[0, H:2 * H].set(params["c_b2"])

    w3 = jnp.zeros((hid_pad, out_pad), jnp.float32)
    w3 = w3.at[:H, :num_actions].set(params["a_w3"])
    w3 = w3.at[H:2 * H, num_actions].set(params["c_w3"][:, 0])
    b3 = jnp.zeros((1, out_pad), jnp.float32)
    b3 = b3.at[0, :num_actions].set(params["a_b3"])
    b3 = b3.at[0, num_actions].set(params["c_b3"][0])

    return {
        "w1": w1.astype(jnp.bfloat16), "b1": b1,
        "w2": w2.astype(jnp.bfloat16), "b2": b2,
        "w3": w3.astype(jnp.bfloat16), "b3": b3,
        "num_inputs": num_inputs, "num_actions": num_actions, "hidden_size": H,
    }


# ----------------------------------------------------------------------------
# Batch tile selection: multiple of 8, <= 1024 rows, minimal row padding,
# and >= 2 grid steps when B > 8 so v7x megacore actually shards the batch.
# ----------------------------------------------------------------------------
def _choose_batch_tile(batch):
    cap = 1024
    if batch <= 8:
        return 8
    n_tiles = max(2, -(-batch // cap))
    return _round_up(-(-batch // n_tiles), 8)


# ----------------------------------------------------------------------------
# Wrapper
# ----------------------------------------------------------------------------
def ppo_actor_critic_forward(state, packed, out_dtype=jnp.float32):
    """state: [B, num_inputs]. packed: output of pack_params."""
    B, num_inputs = state.shape
    num_actions = packed["num_actions"]
    w1, w2, w3 = packed["w1"], packed["w2"], packed["w3"]
    b1, b2, b3 = packed["b1"], packed["b2"], packed["b3"]
    hid_pad = w1.shape[1]
    out_pad = w3.shape[1]

    tb = _choose_batch_tile(B)
    b_pad = _round_up(B, tb)

    x = state.astype(jnp.float32)
    if b_pad != B:
        x = jnp.pad(x, ((0, b_pad - B), (0, 0)))   # only cheap row padding

    kernel = functools.partial(_ppo_fused_kernel, num_actions)
    out = pl.pallas_call(
        kernel,
        out_shape=jax.ShapeDtypeStruct((b_pad, out_pad), out_dtype),
        grid_spec=pltpu.PrefetchScalarGridSpec(
            num_scalar_prefetch=0,
            grid=(b_pad // tb,),
            in_specs=[
                # raw state tile: last dim == full array extent, so no 128-pad
                pl.BlockSpec((tb, num_inputs), lambda i: (i, 0)),
                pl.BlockSpec((num_inputs, hid_pad), lambda i: (0, 0)),  # W1 (resident)
                pl.BlockSpec((1, hid_pad), lambda i: (0, 0)),           # b1
                pl.BlockSpec((hid_pad, hid_pad), lambda i: (0, 0)),     # W2 (resident)
                pl.BlockSpec((1, hid_pad), lambda i: (0, 0)),           # b2
                pl.BlockSpec((hid_pad, out_pad), lambda i: (0, 0)),     # W3 (resident)
                pl.BlockSpec((1, out_pad), lambda i: (0, 0)),           # b3
            ],
            out_specs=pl.BlockSpec((tb, out_pad), lambda i: (i, 0)),
        ),
        compiler_params=pltpu.CompilerParams(
            dimension_semantics=("parallel",),   # megacore sharding on v7x
        ),
    )(x, w1, b1, w2, b2, w3, b3)

    action_dist = out[:B, :num_actions]
    state_value = out[:B, num_actions:num_actions + 1]
    return action_dist, state_value


# ----------------------------------------------------------------------------
# Init (matches the PyTorch module: kaiming_uniform_(nonlinearity='relu'),
# zero biases). Weights stored as [in, out] (transpose of PyTorch's [out, in]).
# ----------------------------------------------------------------------------
def _kaiming_uniform(key, fan_in, fan_out):
    bound = jnp.sqrt(6.0 / fan_in)
    return jax.random.uniform(
        key, (fan_in, fan_out), jnp.float32, minval=-bound, maxval=bound)


def init_params(key, num_inputs, num_actions, hidden_size):
    ks = jax.random.split(key, 6)
    z = lambda n: jnp.zeros((n,), jnp.float32)
    return {
        "a_w1": _kaiming_uniform(ks[0], num_inputs, hidden_size), "a_b1": z(hidden_size),
        "a_w2": _kaiming_uniform(ks[1], hidden_size, hidden_size), "a_b2": z(hidden_size),
        "a_w3": _kaiming_uniform(ks[2], hidden_size, num_actions), "a_b3": z(num_actions),
        "c_w1": _kaiming_uniform(ks[3], num_inputs, hidden_size), "c_b1": z(hidden_size),
        "c_w2": _kaiming_uniform(ks[4], hidden_size, hidden_size), "c_b2": z(hidden_size),
        "c_w3": _kaiming_uniform(ks[5], hidden_size, 1), "c_b3": z(1),
    }


def _reference_forward(state, p):
    hi = lax.Precision.HIGHEST
    relu = lambda t: jnp.maximum(t, 0.0)
    h = relu(jnp.dot(state, p["a_w1"], precision=hi) + p["a_b1"])
    h = relu(jnp.dot(h, p["a_w2"], precision=hi) + p["a_b2"])
    action_dist = jnp.tanh(jnp.dot(h, p["a_w3"], precision=hi) + p["a_b3"])
    v = relu(jnp.dot(state, p["c_w1"], precision=hi) + p["c_b1"])
    v = relu(jnp.dot(v, p["c_w2"], precision=hi) + p["c_b2"])
    state_value = jnp.dot(v, p["c_w3"], precision=hi) + p["c_b3"]
    return action_dist, state_value


if __name__ == "__main__":
    B, num_inputs, num_actions, hidden_size = 8, 32, 4, 32

    key = jax.random.PRNGKey(0)
    k_state, k_params = jax.random.split(key)
    state = jax.random.normal(k_state, (B, num_inputs), dtype=jnp.float32)
    params = init_params(k_params, num_inputs, num_actions, hidden_size)
    packed = pack_params(params, num_inputs, num_actions, hidden_size)

    action_dist, state_value = ppo_actor_critic_forward(state, packed)
    jax.block_until_ready((action_dist, state_value))

    ref_a, ref_v = _reference_forward(state, params)
    assert action_dist.shape == (B, num_actions)
    assert state_value.shape == (B, 1)
    # Tolerance relaxed relative to the pure-f32 variant: MXU operands are bf16
    # (f32 accumulation), which bounds the error to ~1e-2 at these scales.
    assert jnp.allclose(action_dist, ref_a, atol=5e-2, rtol=5e-2)
    assert jnp.allclose(state_value, ref_v, atol=5e-2, rtol=5e-2)

    print("KERNEL_OK")
</pallas_src>

<mosaic_0001>
module attributes {stable_mosaic.version = 11 : i64} {
  func.func @_ppo_fused_kernel(%arg0: i32, %arg1: memref<8x32xf32, #tpu.memory_space<vmem>>, %arg2: memref<32x128xbf16, #tpu.memory_space<vmem>>, %arg3: memref<1x128xf32, #tpu.memory_space<vmem>>, %arg4: memref<128x128xbf16, #tpu.memory_space<vmem>>, %arg5: memref<1x128xf32, #tpu.memory_space<vmem>>, %arg6: memref<128x128xbf16, #tpu.memory_space<vmem>>, %arg7: memref<1x128xf32, #tpu.memory_space<vmem>>, %arg8: memref<8x128xf32, #tpu.memory_space<vmem>>) attributes {dimension_semantics = [#tpu.dimension_semantics<parallel>], iteration_bounds = array<i64: 1>, scalar_prefetch = 0 : i64, scratch_operands = 0 : i64, tpu.core_type = #tpu.core_type<tc>, window_params = [{transform_indices = @transform_0, window_bounds = array<i64: 8, 32>}, {pipeline_mode = #tpu.pipeline_mode<synchronous>, transform_indices = @transform_1, window_bounds = array<i64: 32, 128>}, {pipeline_mode = #tpu.pipeline_mode<synchronous>, transform_indices = @transform_2, window_bounds = array<i64: 1, 128>}, {pipeline_mode = #tpu.pipeline_mode<synchronous>, transform_indices = @transform_3, window_bounds = array<i64: 128, 128>}, {pipeline_mode = #tpu.pipeline_mode<synchronous>, transform_indices = @transform_4, window_bounds = array<i64: 1, 128>}, {pipeline_mode = #tpu.pipeline_mode<synchronous>, transform_indices = @transform_5, window_bounds = array<i64: 128, 128>}, {pipeline_mode = #tpu.pipeline_mode<synchronous>, transform_indices = @transform_6, window_bounds = array<i64: 1, 128>}, {transform_indices = @transform_7, window_bounds = array<i64: 8, 128>}]} {
    %c0 = arith.constant 0 : index
    %c0_0 = arith.constant 0 : index
    %0 = vector.load %arg1[%c0, %c0_0] : memref<8x32xf32, #tpu.memory_space<vmem>>, vector<8x32xf32>
    %1 = arith.truncf %0 : vector<8x32xf32> to vector<8x32xbf16>
    %c0_1 = arith.constant 0 : index
    %c0_2 = arith.constant 0 : index
    %2 = vector.load %arg2[%c0_1, %c0_2] : memref<32x128xbf16, #tpu.memory_space<vmem>>, vector<32x128xbf16>
    %cst = arith.constant dense<0.000000e+00> : vector<8x128xf32>
    %3 = tpu.matmul %1, %2, %cst {dimension_numbers = #tpu.dot_dimension_numbers<[1], [0], [0], [1], [0, 0, 1, 1], [], []>} : vector<8x32xbf16>, vector<32x128xbf16>, vector<8x128xf32> -> vector<8x128xf32>
    %c0_3 = arith.constant 0 : index
    %c0_4 = arith.constant 0 : index
    %4 = vector.load %arg3[%c0_3, %c0_4] : memref<1x128xf32, #tpu.memory_space<vmem>>, vector<1x128xf32>
    %5 = vector.broadcast %4 : vector<1x128xf32> to vector<8x128xf32>
    %6 = arith.addf %3, %5 : vector<8x128xf32>
    %cst_5 = arith.constant 0.000000e+00 : f32
    %7 = vector.broadcast %cst_5 : f32 to vector<8x128xf32>
    %8 = arith.maximumf %6, %7 : vector<8x128xf32>
    %9 = arith.truncf %8 : vector<8x128xf32> to vector<8x128xbf16>
    %c0_6 = arith.constant 0 : index
    %c0_7 = arith.constant 0 : index
    %10 = vector.load %arg4[%c0_6, %c0_7] : memref<128x128xbf16, #tpu.memory_space<vmem>>, vector<128x128xbf16>
    %cst_8 = arith.constant dense<0.000000e+00> : vector<8x128xf32>
    %11 = tpu.matmul %9, %10, %cst_8 {dimension_numbers = #tpu.dot_dimension_numbers<[1], [0], [0], [1], [0, 0, 1, 1], [], []>} : vector<8x128xbf16>, vector<128x128xbf16>, vector<8x128xf32> -> vector<8x128xf32>
    %c0_9 = arith.constant 0 : index
    %c0_10 = arith.constant 0 : index
    %12 = vector.load %arg5[%c0_9, %c0_10] : memref<1x128xf32, #tpu.memory_space<vmem>>, vector<1x128xf32>
    %13 = vector.broadcast %12 : vector<1x128xf32> to vector<8x128xf32>
    %14 = arith.addf %11, %13 : vector<8x128xf32>
    %cst_11 = arith.constant 0.000000e+00 : f32
    %15 = vector.broadcast %cst_11 : f32 to vector<8x128xf32>
    %16 = arith.maximumf %14, %15 : vector<8x128xf32>
    %17 = arith.truncf %16 : vector<8x128xf32> to vector<8x128xbf16>
    %c0_12 = arith.constant 0 : index
    %c0_13 = arith.constant 0 : index
    %18 = vector.load %arg6[%c0_12, %c0_13] : memref<128x128xbf16, #tpu.memory_space<vmem>>, vector<128x128xbf16>
    %cst_14 = arith.constant dense<0.000000e+00> : vector<8x128xf32>
    %19 = tpu.matmul %17, %18, %cst_14 {dimension_numbers = #tpu.dot_dimension_numbers<[1], [0], [0], [1], [0, 0, 1, 1], [], []>} : vector<8x128xbf16>, vector<128x128xbf16>, vector<8x128xf32> -> vector<8x128xf32>
    %c0_15 = arith.constant 0 : index
    %c0_16 = arith.constant 0 : index
    %20 = vector.load %arg7[%c0_15, %c0_16] : memref<1x128xf32, #tpu.memory_space<vmem>>, vector<1x128xf32>
    %21 = vector.broadcast %20 : vector<1x128xf32> to vector<8x128xf32>
    %22 = arith.addf %19, %21 : vector<8x128xf32>
    %23 = tpu.iota {dimensions = array<i32: 1>} : vector<8x128xi32>
    %c4_i32 = arith.constant 4 : i32
    %24 = vector.broadcast %c4_i32 : i32 to vector<8x128xi32>
    %25 = arith.cmpi slt, %23, %24 : vector<8x128xi32>
    %26 = math.tanh %22 : vector<8x128xf32>
    %27 = arith.select %25, %26, %22 : vector<8x128xi1>, vector<8x128xf32>
    %c0_17 = arith.constant 0 : index
    %c0_18 = arith.constant 0 : index
    %28 = vector.load %arg8[%c0_17, %c0_18] : memref<8x128xf32, #tpu.memory_space<vmem>>, vector<8x128xf32>
    tpu.vector_store %arg8[%c0_17, %c0_18], %27 {strides = array<i32>} : memref<8x128xf32, #tpu.memory_space<vmem>>, vector<8x128xf32>,
    return
  }
  func.func @transform_0(%arg0: i32) -> (i32, i32) {
    %c0_i32 = arith.constant 0 : i32
    %c0_i32_0 = arith.constant 0 : i32
    return %arg0, %c0_i32 : i32, i32
  }
  func.func @transform_1(%arg0: i32) -> (i32, i32) {
    %c0_i32 = arith.constant 0 : i32
    %c0_i32_0 = arith.constant 0 : i32
    %c0_i32_1 = arith.constant 0 : i32
    return %c0_i32, %c0_i32_0 : i32, i32
  }
  func.func @transform_2(%arg0: i32) -> (i32, i32) {
    %c0_i32 = arith.constant 0 : i32
    %c0_i32_0 = arith.constant 0 : i32
    %c0_i32_1 = arith.constant 0 : i32
    return %c0_i32, %c0_i32_0 : i32, i32
  }
  func.func @transform_3(%arg0: i32) -> (i32, i32) {
    %c0_i32 = arith.constant 0 : i32
    %c0_i32_0 = arith.constant 0 : i32
    %c0_i32_1 = arith.constant 0 : i32
    return %c0_i32, %c0_i32_0 : i32, i32
  }
  func.func @transform_4(%arg0: i32) -> (i32, i32) {
    %c0_i32 = arith.constant 0 : i32
    %c0_i32_0 = arith.constant 0 : i32
    %c0_i32_1 = arith.constant 0 : i32
    return %c0_i32, %c0_i32_0 : i32, i32
  }
  func.func @transform_5(%arg0: i32) -> (i32, i32) {
    %c0_i32 = arith.constant 0 : i32
    %c0_i32_0 = arith.constant 0 : i32
    %c0_i32_1 = arith.constant 0 : i32
    return %c0_i32, %c0_i32_0 : i32, i32
  }
  func.func @transform_6(%arg0: i32) -> (i32, i32) {
    %c0_i32 = arith.constant 0 : i32
    %c0_i32_0 = arith.constant 0 : i32
    %c0_i32_1 = arith.constant 0 : i32
    return %c0_i32, %c0_i32_0 : i32, i32
  }
  func.func @transform_7(%arg0: i32) -> (i32, i32) {
    %c0_i32 = arith.constant 0 : i32
    %c0_i32_0 = arith.constant 0 : i32
    return %arg0, %c0_i32 : i32, i32
  }
}

</mosaic_0001>

<bundles_post_ra>
// kernel: tpu_custom_call.1
= control target key start
LH: loop header
LB: loop body
LE: loop exit
PB: predicated region body
PF: predicated region fallthrough
CT: control target
= control target key end

     0   :  { %12 = vsyncpa [#allocation3], 0  ;;  %s788_s0 = inlined_call_operand.hbm [shape: f32[8,32], index: 0, kind: input, shape index: {}]   ;;  %s789_s1 = inlined_call_operand.hbm [shape: bf16[32,128], index: 1, kind: input, shape index: {}]   ;;  %s790_s2 = inlined_call_operand.vmem [shape: f32[1,128], index: 2, kind: input, shape index: {}]   ;;  %s791_s3 = inlined_call_operand.hbm [shape: bf16[128,128], index: 3, kind: input, shape index: {}]   ;;  %s792_s4 = inlined_call_operand.vmem [shape: f32[1,128], index: 4, kind: input, shape index: {}]   ;;  %s793_s5 = inlined_call_operand.hbm [shape: bf16[128,128], index: 5, kind: input, shape index: {}]   ;;  %s794_s6 = inlined_call_operand.vmem [shape: f32[1,128], index: 6, kind: input, shape index: {}]   ;;  %s795_s7 = inlined_call_operand.hbm [shape: f32[8,128], index: 7, kind: output, shape index: {}]  }
   0x1   :  { %13 = vsyncpa [#allocation6], 0 }
   0x2   :  { %14 = vsyncpa [#allocation9], 0 }
   0x3   :  { %15 = vsyncpa [#allocation4], 0  ;;  %s637_s24 = smov [#allocation5]   ;;  %s519_s28 = scalar_lea.hbm %s789_s1, 256 }
   0x4   :  { %s31_s25 = sshll.u32 %s637_s24, 4  ;;  %p520_p0 = scmp.ne.s32.totalorder %s789_s1, %s519_s28  ;;  %s32_s25 = int_to_ptr.vmem [resolvable:$true] %s31_s25 }
   0x5   :  { %p523_p1 = scmp.lt.u32.totalorder %s519_s28, %s789_s1 }
   0x7   :  { %p525_p2 = pnand %p523_p1, %p520_p0 }
   0x9   :  { %528 = shalt.err (!%p525_p2)
}
   0xa   :  { %s529_s10 = scalar_lea.vmem %s32_s25, 256  ;;  %p534_p4 = scmp.lt.s32.totalorder %s32_s25, %s32_s25 }
   0xb   :  { %p530_p3 = scmp.ne.s32.totalorder %s32_s25, %s529_s10  ;;  %p535_p5 = scmp.lt.s32.totalorder %s529_s10, %s529_s10 }
   0xd   :  { %p536_p6 = por %p535_p5, %p534_p4 }
   0xf   :  { %p537_p7 = pnand %p536_p6, %p530_p3 }
  0x11   :  { %540 = shalt.err (!%p537_p7)
}
  0x12   :  { %s638_s11 = smov 64   ;;  %s639_s12 = smov 4  }
  0x13   :  { %37 = dma.hbm_to_vmem [thread:$0]  %s789_s1, 256, %s32_s25, [#allocation6], %s638_s11, %s638_s11, %s639_s12  }
  0x14   :  { %s640_s15 = smov [#allocation2]   ;;  %s641_s17 = smov [#allocation7]  }
  0x15   :  { %s22_s16 = sshll.u32 %s640_s15, 4  ;;  %s45_s18 = sshll.u32 %s641_s17, 4  ;;  %s23_s16 = int_to_ptr.vmem [resolvable:$true] %s22_s16  ;;  %s46_s18 = int_to_ptr.vmem [resolvable:$true] %s45_s18 }
  0x16   :  { %s541_s21 = scalar_lea.hbm %s788_s0, 128 }
  0x17   :  { %p542_p8 = scmp.ne.s32.totalorder %s788_s0, %s541_s21  ;;  %p545_p9 = scmp.lt.u32.totalorder %s541_s21, %s788_s0 }
  0x19   :  { %p547_p10 = pnand %p545_p9, %p542_p8 }
  0x1b   :  { %550 = shalt.err (!%p547_p10)
}
  0x1c   :  { %s551_s1 = scalar_lea.vmem %s23_s16, 128  ;;  %p556_p12 = scmp.lt.s32.totalorder %s23_s16, %s23_s16 }
  0x1d   :  { %p552_p11 = scmp.ne.s32.totalorder %s23_s16, %s551_s1  ;;  %p557_p13 = scmp.lt.s32.totalorder %s551_s1, %s551_s1 }
  0x1f   :  { %p558_p0 = por %p557_p13, %p556_p12 }
  0x21   :  { %p559_p1 = pnand %p558_p0, %p552_p11 }
  0x23   :  { %562 = shalt.err (!%p559_p1)
}
  0x24   :  { %25 = dma.hbm_to_vmem [thread:$0]  %s788_s0, 128, %s23_s16, [#allocation3]  }
  0x25   :  { %s563_s30 = scalar_lea.hbm %s791_s3, 1024 }
  0x26   :  { %p564_p2 = scmp.ne.s32.totalorder %s791_s3, %s563_s30  ;;  %p567_p3 = scmp.lt.u32.totalorder %s563_s30, %s791_s3 }
  0x28   :  { %p569_p4 = pnand %p567_p3, %p564_p2 }
  0x2a   :  { %572 = shalt.err (!%p569_p4)
}
  0x2b   :  { %s573_s14 = scalar_lea.vmem %s46_s18, 1024  ;;  %p578_p6 = scmp.lt.s32.totalorder %s46_s18, %s46_s18 }
  0x2c   :  { %p574_p5 = scmp.ne.s32.totalorder %s46_s18, %s573_s14  ;;  %p579_p7 = scmp.lt.s32.totalorder %s573_s14, %s573_s14 }
  0x2e   :  { %p580_p8 = por %p579_p7, %p578_p6 }
  0x30   :  { %p581_p9 = pnand %p580_p8, %p574_p5 }
  0x32   :  { %584 = shalt.err (!%p581_p9)
}
  0x33   :  { %51 = dma.hbm_to_vmem [thread:$0]  %s791_s3, 1024, %s46_s18, [#allocation6], %s638_s11, %s638_s11, %s639_s12  }
  0x34   :  { %s642_s16 = smov [#allocation8]   ;;  %s585_s21 = scalar_lea.hbm %s793_s5, 1024 }
  0x35   :  { %s59_s17 = sshll.u32 %s642_s16, 4  ;;  %p586_p10 = scmp.ne.s32.totalorder %s793_s5, %s585_s21  ;;  %s60_s17 = int_to_ptr.vmem [resolvable:$true] %s59_s17 }
  0x36   :  { %p589_p11 = scmp.lt.u32.totalorder %s585_s21, %s793_s5 }
  0x38   :  { %p591_p12 = pnand %p589_p11, %p586_p10 }
  0x3a   :  { %594 = shalt.err (!%p591_p12)
}
  0x3b   :  { %s595_s1 = scalar_lea.vmem %s60_s17, 1024  ;;  %p600_p0 = scmp.lt.s32.totalorder %s60_s17, %s60_s17 }
  0x3c   :  { %p596_p13 = scmp.ne.s32.totalorder %s60_s17, %s595_s1  ;;  %p601_p1 = scmp.lt.s32.totalorder %s595_s1, %s595_s1 }
  0x3e   :  { %p602_p2 = por %p601_p1, %p600_p0 }
  0x40   :  { %p603_p3 = pnand %p602_p2, %p596_p13 }
  0x42   :  { %606 = shalt.err (!%p603_p3)
}
  0x43   :  { %65 = dma.hbm_to_vmem [thread:$0]  %s793_s5, 1024, %s60_s17, [#allocation9], %s638_s11, %s638_s11, %s639_s12  }
  0x44   :  { %629 = dma.done.wait [#allocation3], 128  }
  0x45   :  { %630 = vsyncadd [#allocation3], 4294967168 }
  0x46   :  { %631 = dma.done.wait [#allocation6], 1280  }
  0x47   :  { %632 = vsyncadd [#allocation6], 4294966016 }
  0x48   :  { %633 = dma.done.wait [#allocation9], 1024  }
  0x49   :  { %634 = vsyncadd [#allocation9], 4294966272  ;;  %v643_v0 = vmov 0.0   ;;  %vm644_vm0 = vmmov 0   ;;  %v499_v1 = vld [vmem:[#allocation5] sm:$0xff]   ;;  %v500_v2 = vld [vmem:[#allocation5 + $0x8] sm:$0xff]   ;;  %v376_v43 = vlaneseq }
  0x4a   :  { %442 = vmatprep.subr.bf16.mxu0 %v643_v0  ;;  %446 = vmatprep.mubr.msk.bf16.mxu0 %vm644_vm0, %v643_v0  ;;  %v81_v3 = vld [vmem:[#allocation2] sm:$0xff]  ;;  %v501_v4 = vld [vmem:[#allocation7] sm:$0xff]   ;;  %vm106_vm1 = vcmask 261120   ;;  %v503_v7 = vld [vmem:[#allocation7 + $0x10] sm:$0xff]  }
  0x4b   :  { %450 = vmatprep.subr.bf16.mxu1 %v643_v0  ;;  %466 = vmatprep.mubr.msk.bf16.mxu1 %vm644_vm0, %v643_v0  ;;  %v82_v5 = vpack.c.bf16 %v81_v3, %v81_v3  ;;  %v502_v6 = vld [vmem:[#allocation7 + $0x8] sm:$0xff]   ;;  %v504_v8 = vld [vmem:[#allocation7 + $0x18] sm:$0xff]   ;;  %v505_v9 = vld [vmem:[#allocation7 + $0x20] sm:$0xff]   ;;  %v377_v44 = vand.u32 127, %v376_v43 }
  0x4c   :  { %443 = vmatpush3.bf16.msra.mxu0 %v499_v1  ;;  %451 = vmatpush3.bf16.msra.mxu1 %v501_v4  ;;  %v506_v10 = vld [vmem:[#allocation7 + $0x28] sm:$0xff]   ;;  %v507_v11 = vld [vmem:[#allocation7 + $0x30] sm:$0xff]   ;;  %v508_v12 = vld [vmem:[#allocation7 + $0x38] sm:$0xff]  }
  0x4d   :  { %444 = vmatprep.subr.bf16.mxu0 %v643_v0  ;;  %452 = vmatprep.subr.bf16.mxu1 %v643_v0  ;;  %v509_v13 = vld [vmem:[#allocation8] sm:$0xff]   ;;  %v510_v14 = vld [vmem:[#allocation8 + $0x8] sm:$0xff]   ;;  %v511_v15 = vld [vmem:[#allocation8 + $0x10] sm:$0xff]   ;;  %vm378_vm2 = vcmp.lt.s32.totalorder %v377_v44, 4 }
  0x4e   :  { %v512_v16 = vld [vmem:[#allocation8 + $0x18] sm:$0xff]   ;;  %v513_v17 = vld [vmem:[#allocation8 + $0x20] sm:$0xff]   ;;  %v514_v18 = vld [vmem:[#allocation8 + $0x28] sm:$0xff]  }
  0x4f   :  { %v399_v19 = vld [vmem:[%s790_s2] ss:$0 sm:$0xff]  ;;  %v515_v27 = vld [vmem:[#allocation8 + $0x30] sm:$0xff]   ;;  %v516_v28 = vld [vmem:[#allocation8 + $0x38] sm:$0xff]  }
  0x50   :  { %445 = vmatpush3.bf16.msra.mxu0 %v500_v2  ;;  %453 = vmatpush3.bf16.msra.mxu1 %v502_v6  ;;  %v403_v29 = vld [vmem:[%s792_s4] ss:$0 sm:$0xff]  ;;  %s645_s4 = smov [#allocation10]  }
  0x51   :  { %470 = vmatprep.subr.bf16.mxu0 %v643_v0  ;;  %454 = vmatprep.subr.bf16.mxu1 %v643_v0  ;;  %v412_v37 = vld [vmem:[%s794_s6] ss:$0 sm:$0xff]  ;;  %s388_s28 = sshll.u32 %s645_s4, 4  ;;  %s389_s28 = int_to_ptr.vmem [resolvable:$true] %s388_s28 }
  0x52   :  { %s607_s29 = scalar_lea.vmem %s389_s28, 128  ;;  %p612_p5 = scmp.lt.s32.totalorder %s389_s28, %s389_s28 }
  0x53   :  { %447 = vmatmul.mubr.msk.bf16.vlgmr.msra.gmra.mrb[0].mxu0 %vm106_vm1, %v82_v5  ;;  %p608_p4 = scmp.ne.s32.totalorder %s389_s28, %s607_s29  ;;  %p613_p6 = scmp.lt.s32.totalorder %s607_s29, %s607_s29 }
  0x54   :  { %486 = vmatprep.mubr.msk.bf16.mxu0 %vm644_vm0, %v643_v0  ;;  %455 = vmatpush3.bf16.msra.mxu1 %v503_v7 }
  0x55   :  { %456 = vmatprep.subr.bf16.mxu1 %v643_v0  ;;  %471 = vmatpush3.bf16.msra.mxu0 %v509_v13  ;;  %p614_p7 = por %p613_p6, %p612_p5 }
  0x56   :  { %472 = vmatprep.subr.bf16.mxu0 %v643_v0 }
  0x57   :  { %p615_p8 = pnand %p614_p7, %p608_p4 }
  0x58   :  { %457 = vmatpush3.bf16.msra.mxu1 %v504_v8 }
  0x59   :  { %458 = vmatprep.subr.bf16.mxu1 %v643_v0  ;;  %473 = vmatpush3.bf16.msra.mxu0 %v510_v14 }
  0x5a   :  { %474 = vmatprep.subr.bf16.mxu0 %v643_v0 }
  0x5c   :  { %459 = vmatpush3.bf16.msra.mxu1 %v505_v9 }
  0x5d   :  { %460 = vmatprep.subr.bf16.mxu1 %v643_v0  ;;  %475 = vmatpush3.bf16.msra.mxu0 %v511_v15 }
  0x5e   :  { %476 = vmatprep.subr.bf16.mxu0 %v643_v0 }
  0x60   :  { %461 = vmatpush3.bf16.msra.mxu1 %v506_v10 }
  0x61   :  { %462 = vmatprep.subr.bf16.mxu1 %v643_v0  ;;  %477 = vmatpush3.bf16.msra.mxu0 %v512_v16 }
  0x62   :  { %478 = vmatprep.subr.bf16.mxu0 %v643_v0 }
  0x64   :  { %463 = vmatpush3.bf16.msra.mxu1 %v507_v11 }
  0x65   :  { %464 = vmatprep.subr.bf16.mxu1 %v643_v0  ;;  %479 = vmatpush3.bf16.msra.mxu0 %v513_v17 }
  0x66   :  { %480 = vmatprep.subr.bf16.mxu0 %v643_v0 }
  0x68   :  { %465 = vmatpush3.bf16.msra.mxu1 %v508_v12 }
  0x69   :  { %481 = vmatpush3.bf16.msra.mxu0 %v514_v18 }
  0x6a   :  { %482 = vmatprep.subr.bf16.mxu0 %v643_v0 }
  0x6d   :  { %483 = vmatpush3.bf16.msra.mxu0 %v515_v27 }
  0x6e   :  { %484 = vmatprep.subr.bf16.mxu0 %v643_v0 }
  0x71   :  { %485 = vmatpush3.bf16.msra.mxu0 %v516_v28 }
 0x126   :  { %v144_v20 = vpop.f32.mrb[0].mxu0 }
 0x127   :  { %v145_v21 = vadd.f32 %v399_v19, %v144_v20  ;;  %v448_v22 = vpop.f32.mrb[1].mxu0 }
 0x128   :  { %v147_v23 = vpop.f32.mrb[2].mxu0 }
 0x129   :  { %v150_v24 = vmax.f32 %v145_v21, 0.0  ;;  %v449_v25 = vpop.f32.mrb[3].mxu0 }
 0x12b   :  { %v151_v26 = vpack.c.bf16 %v150_v24, %v150_v24 }
 0x12d   :  { %467 = vmatmul.mubr.bf16.vlgmr.msra.gmra.mrb[0].mxu1 %v151_v26 }
 0x200   :  { %v257_v30 = vpop.f32.mrb[0].mxu1 }
 0x201   :  { %v258_v31 = vadd.f32 %v403_v29, %v257_v30  ;;  %v468_v32 = vpop.f32.mrb[1].mxu1 }
 0x202   :  { %v260_v33 = vpop.f32.mrb[2].mxu1 }
 0x203   :  { %v263_v34 = vmax.f32 %v258_v31, 0.0  ;;  %v469_v35 = vpop.f32.mrb[3].mxu1 }
 0x205   :  { %v264_v36 = vpack.c.bf16 %v263_v34, %v263_v34 }
 0x207   :  { %487 = vmatmul.mubr.bf16.vlgmr.msra.gmra.mrb[4].mxu0 %v264_v36 }
 0x2da   :  { %v370_v38 = vpop.f32.mrb[4].mxu0 }
 0x2db   :  { %v371_v39 = vadd.f32 %v412_v37, %v370_v38  ;;  %v488_v40 = vpop.f32.mrb[5].mxu0 }
 0x2dc   :  { %v373_v41 = vpop.f32.mrb[6].mxu0 }
 0x2dd   :  { %517 = vtanh.f32 %v371_v39  ;;  %v489_v42 = vpop.f32.mrb[7].mxu0 }
 0x2e7   :  { %v518_v45 = vpop.eup %517 }
 0x2e8   :  { %v380_v46 = vsel %vm378_vm2, %v518_v45, %v371_v39 }
 0x2e9   :  { %381 = vst [vmem:[#allocation10] sm:$0xff] %v380_v46 }
 0x2ea   :  { %618 = shalt.err (!%p615_p8)
}
 0x2eb   :  { %s619_s8 = scalar_lea.hbm %s795_s7, 128 }
 0x2ec   :  { %p620_p9 = scmp.ne.s32.totalorder %s795_s7, %s619_s8  ;;  %p623_p10 = scmp.lt.u32.totalorder %s619_s8, %s795_s7 }
 0x2ee   :  { %p625_p11 = pnand %p623_p10, %p620_p9 }
 0x2f0   :  { %628 = shalt.err (!%p625_p11)
}
 0x2f1   :  { %391 = dma.vmem_to_hbm [thread:$0]  %s389_s28, 128, %s795_s7, [#allocation4]  }
 0x2f2   :  { %635 = dma.done.wait [#allocation4], 128  }
 0x2f3   :  { %636 = vsyncadd [#allocation4], 4294967168 }
 0x2f4   :  { %395 = vsyncpa [#allocation3], 1 }
 0x2f5   :  { %396 = vsyncpa [#allocation6], 1 }
 0x2f6   :  { %397 = vsyncpa [#allocation9], 1 }
 0x2f7   :  { %398 = vsyncpa [#allocation4], 1 }

</bundles_post_ra>
